<compile_context>
chip_gen: v5e
topology: v5e:2x2
jax: 0.10.0
libtpu: 0.0.40
codegen_flags: <defaults>
</compile_context>

<pallas_src>
import jax
import jax.numpy as jnp
from jax.experimental import pallas as pl
from jax.experimental.pallas import tpu as pltpu


def _linear_add_kernel(x_ref, w2_ref, add_ref, out_ref):
    # x_ref:   (TM2, 128)  two logical 64-wide rows packed per physical row
    # w2_ref:  (128, 128)  blockdiag(W^T, W^T), resident (constant block idx)
    # add_ref: (32, 128)   packed (bias + other) for one 64-row batch slice
    # out_ref: (TM2, 128)
    y = jnp.dot(x_ref[...], w2_ref[...], preferred_element_type=jnp.float32)
    reps = out_ref.shape[0] // add_ref.shape[0]          # TM2 // 32 (static)
    add = jnp.tile(add_ref[...], (reps, 1))              # sublane broadcast (VPU/VMEM only)
    out_ref[...] = (y + add).astype(out_ref.dtype)


def linear_plus_other(x, weight, bias, other, *, max_tm=16384, io_dtype=None):
    """Computes x @ weight.T + bias + other, like Model.forward."""
    B, M, K = x.shape
    assert (M, K) == (64, 64) and weight.shape == (64, 64)

    rows = B * M                      # fold batch into the matmul M dim
    n_units = rows // 64              # number of 64-row (one batch elem) slices

    # ---- lane-dense repack: (rows, 64) -> (rows//2, 128) -------------------
    out_dtype = io_dtype if io_dtype is not None else x.dtype
    x2 = x.reshape(rows // 2, 128)
    if io_dtype is not None:
        x2 = x2.astype(io_dtype)

    # Block-diagonal weight W2 = blockdiag(W^T, W^T): (128, 128), f32.
    wt = weight.T.astype(jnp.float32)
    w2 = jnp.zeros((128, 128), jnp.float32)
    w2 = w2.at[:64, :64].set(wt)
    w2 = w2.at[64:, 64:].set(wt)

    # Fused add term (bias folded into other), packed (64,64) -> (32,128).
    # TODO(synk): w2 / fused2 are tiny per-call XLA ops; precompute once per
    #             parameter set outside the hot path if this wrapper is hot.
    fused2 = (other + bias[None, :]).astype(jnp.float32).reshape(32, 128)

    # ---- tiling -------------------------------------------------------------
    # TM rows per step (multiple of 64 so the 64-row add pattern stays aligned),
    # capped by max_tm and forced to give >= 2 grid steps (v7x megacore).
    units_per_tile = max(1, min(max_tm // 64, pl.cdiv(n_units, 2)))
    TM2 = 32 * units_per_tile                       # packed rows per step
    grid = pl.cdiv(n_units, units_per_tile)

    out2 = pl.pallas_call(
        _linear_add_kernel,
        out_shape=jax.ShapeDtypeStruct((rows // 2, 128), out_dtype),
        grid_spec=pltpu.PrefetchScalarGridSpec(
            num_scalar_prefetch=0,
            grid=(grid,),
            in_specs=[
                pl.BlockSpec((TM2, 128), lambda i: (i, 0)),   # x rows (streamed)
                pl.BlockSpec((128, 128), lambda i: (0, 0)),   # W2 (resident)
                pl.BlockSpec((32, 128), lambda i: (0, 0)),    # fused add (resident)
            ],
            out_specs=pl.BlockSpec((TM2, 128), lambda i: (i, 0)),
        ),
        compiler_params=pltpu.CompilerParams(
            dimension_semantics=("parallel",),
        ),
    )(x2, w2, fused2)

    return out2.reshape(B, M, 64)


if __name__ == "__main__":
    key = jax.random.PRNGKey(0)
    kx, kw, kb, ko = jax.random.split(key, 4)

    # Parameters matching nn.Linear(64, 64) and Parameter(randn(64, 64)).
    bound = 1.0 / jnp.sqrt(64.0)
    weight = jax.random.uniform(kw, (64, 64), jnp.float32, -bound, bound)  # (out, in)
    bias = jax.random.uniform(kb, (64,), jnp.float32, -bound, bound)
    other = jax.random.normal(ko, (64, 64), jnp.float32)

    # Small shape consistent with the module's forward.
    B = 2
    x = jax.random.normal(kx, (B, 64, 64), jnp.float32)

    out = linear_plus_other(x, weight, bias, other)
    out = jax.block_until_ready(out)

    ref = x @ weight.T + bias + other
    assert out.shape == (B, 64, 64)
    assert jnp.allclose(out, ref, atol=1e-5, rtol=1e-5)

    # Exercise the multi-tile path with a ragged final tile (grid=2, last tile
    # partial) to validate masked writeback.
    B2 = 5
    x5 = jax.random.normal(kx, (B2, 64, 64), jnp.float32)
    out5 = jax.block_until_ready(
        linear_plus_other(x5, weight, bias, other, max_tm=192)
    )
    ref5 = x5 @ weight.T + bias + other
    assert jnp.allclose(out5, ref5, atol=1e-5, rtol=1e-5)

    print("KERNEL_OK")
</pallas_src>

<mosaic_0001>
module attributes {stable_mosaic.version = 11 : i64} {
  func.func @_linear_add_kernel(%arg0: i32, %arg1: memref<32x128xf32, #tpu.memory_space<vmem>>, %arg2: memref<128x128xf32, #tpu.memory_space<vmem>>, %arg3: memref<32x128xf32, #tpu.memory_space<vmem>>, %arg4: memref<32x128xf32, #tpu.memory_space<vmem>>) attributes {dimension_semantics = [#tpu.dimension_semantics<parallel>], iteration_bounds = array<i64: 2>, scalar_prefetch = 0 : i64, scratch_operands = 0 : i64, tpu.core_type = #tpu.core_type<tc>, window_params = [{transform_indices = @transform_0, window_bounds = array<i64: 32, 128>}, {pipeline_mode = #tpu.pipeline_mode<synchronous>, transform_indices = @transform_1, window_bounds = array<i64: 128, 128>}, {pipeline_mode = #tpu.pipeline_mode<synchronous>, transform_indices = @transform_2, window_bounds = array<i64: 32, 128>}, {transform_indices = @transform_3, window_bounds = array<i64: 32, 128>}]} {
    %c0 = arith.constant 0 : index
    %c0_0 = arith.constant 0 : index
    %0 = vector.load %arg1[%c0, %c0_0] : memref<32x128xf32, #tpu.memory_space<vmem>>, vector<32x128xf32>
    %c0_1 = arith.constant 0 : index
    %c0_2 = arith.constant 0 : index
    %1 = vector.load %arg2[%c0_1, %c0_2] : memref<128x128xf32, #tpu.memory_space<vmem>>, vector<128x128xf32>
    %cst = arith.constant dense<0.000000e+00> : vector<32x128xf32>
    %2 = tpu.matmul %0, %1, %cst {dimension_numbers = #tpu.dot_dimension_numbers<[1], [0], [0], [1], [0, 0, 1, 1], [], []>} : vector<32x128xf32>, vector<128x128xf32>, vector<32x128xf32> -> vector<32x128xf32>
    %c0_3 = arith.constant 0 : index
    %c0_4 = arith.constant 0 : index
    %3 = vector.load %arg3[%c0_3, %c0_4] : memref<32x128xf32, #tpu.memory_space<vmem>>, vector<32x128xf32>
    %4 = arith.addf %2, %3 : vector<32x128xf32>
    %c0_5 = arith.constant 0 : index
    %c0_6 = arith.constant 0 : index
    %5 = vector.load %arg4[%c0_5, %c0_6] : memref<32x128xf32, #tpu.memory_space<vmem>>, vector<32x128xf32>
    tpu.vector_store %arg4[%c0_5, %c0_6], %4 {strides = array<i32>} : memref<32x128xf32, #tpu.memory_space<vmem>>, vector<32x128xf32>,
    return
  }
  func.func @transform_0(%arg0: i32) -> (i32, i32) {
    %c0_i32 = arith.constant 0 : i32
    %c0_i32_0 = arith.constant 0 : i32
    return %arg0, %c0_i32 : i32, i32
  }
  func.func @transform_1(%arg0: i32) -> (i32, i32) {
    %c0_i32 = arith.constant 0 : i32
    %c0_i32_0 = arith.constant 0 : i32
    %c0_i32_1 = arith.constant 0 : i32
    return %c0_i32, %c0_i32_0 : i32, i32
  }
  func.func @transform_2(%arg0: i32) -> (i32, i32) {
    %c0_i32 = arith.constant 0 : i32
    %c0_i32_0 = arith.constant 0 : i32
    %c0_i32_1 = arith.constant 0 : i32
    return %c0_i32, %c0_i32_0 : i32, i32
  }
  func.func @transform_3(%arg0: i32) -> (i32, i32) {
    %c0_i32 = arith.constant 0 : i32
    %c0_i32_0 = arith.constant 0 : i32
    return %arg0, %c0_i32 : i32, i32
  }
}

</mosaic_0001>

<bundles_post_ra>
// kernel: tpu_custom_call.1
= control target key start
LH: loop header
LB: loop body
LE: loop exit
PB: predicated region body
PF: predicated region fallthrough
CT: control target
= control target key end

     0   :  { %8 = vsyncpa [#allocation3], 0  ;;  %s878_s0 = inlined_call_operand.hbm [shape: f32[64,128], index: 0, kind: input, shape index: {}]   ;;  %s879_s1 = inlined_call_operand.hbm [shape: f32[128,128], index: 1, kind: input, shape index: {}]   ;;  %s880_s2 = inlined_call_operand.hbm [shape: f32[32,128], index: 2, kind: input, shape index: {}]   ;;  %s881_s3 = inlined_call_operand.hbm [shape: f32[64,128], index: 3, kind: output, shape index: {}]  }
   0x1   :  { %10 = vsyncpa [#allocation3 + $0x1], 0 }
   0x2   :  { %11 = vsyncpa [#allocation6], 0 }
   0x3   :  { %12 = vsyncpa [#allocation4], 0 }
   0x4   :  { %14 = vsyncpa [#allocation4 + $0x1], 0  ;;  %s718_s12 = smov 0   ;;  %s720_s13 = smov 0  }
   0x5   :  { %s722_s14 = smov 0   ;;  %s724_s15 = smov 0  }
   0x6 LB: > { %s739_s16 = sadd.s32 4294967295, %s690_s15   ;;  %s391_s17 = sadd.s32 4294967294, %s690_s15   ;;  %s690_s15 = sphi %s724_s15, %s891_s15   ;;  %s686_s14 = sphi %s722_s14, %s890_s14   ;;  %s682_s13 = sphi %s720_s13, %s889_s13   ;;  %s678_s12 = sphi %s718_s12, %s888_s12  }
   0x7   : > { %p40_p0 = scmp.ne.s32.totalorder %s682_s13, %s678_s12  ;;  %p41_p1 = scmp.eq.s32.totalorder %s739_s16, 0 }
   0x8   : > { %p106_p2 = scmp.eq.s32.totalorder %s739_s16, 1  ;;  %p112_p3 = scmp.eq.s32.totalorder %s391_s17, 1 }
   0x9   : > { %p748_p4 = por %p41_p1, %p40_p0  ;;  %p392_p5 = scmp.ge.s32.totalorder %s690_s15, 1 }
   0xa   : > { %p753_p6 = por %p112_p3, %p40_p0  ;;  %p119_p7 = scmp.lt.s32.totalorder %s690_s15, 3 }
   0xb   : > { %s130_s22 = sshll.u32 %s879_s1, 4  ;;  %s692_s24 = smov [#allocation5]   ;;  %s131_s22 = int_to_ptr.hbm [resolvable:$true] %s130_s22 }
   0xc   : > { %p761_p8 = pnand %p392_p5, %p119_p7  ;;  %s132_s25 = sshll.u32 %s692_s24, 4  ;;  %s133_s25 = int_to_ptr.vmem [resolvable:$true] %s132_s25 }
   0xd   : > { %s144_s28 = sshll.u32 %s880_s2, 4  ;;  %s693_s29 = smov 128   ;;  %s145_s28 = int_to_ptr.hbm [resolvable:$true] %s144_s28 }
   0xe   : > { %p471_p9 = pneg %p761_p8  ;;  %s694_s30 = smov 8  }
   0xf   : > { %s695_s4 = smov [#allocation7]   ;;  %s780_s6 = sadd.s32 1, %s690_s15  }
  0x10   : > { %p472_p10 = pnand %p471_p9, %p41_p1  ;;  %s146_s5 = sshll.u32 %s695_s4, 4  ;;  %s147_s5 = int_to_ptr.vmem [resolvable:$true] %s146_s5 }
  0x11   : > { %s27_s7 = sadd.s32 1, %s686_s14  ;;  %s24_s8 = ssub.s32 %s690_s15, %s780_s6 }
  0x12   : > { %474 = dma.hbm_to_vmem [thread:$0]  (!%p472_p10), %s131_s22, 2048, %s133_s25, [#allocation6], %s693_s29, %s693_s29, %s694_s30  }
  0x13   : > { %477 = dma.hbm_to_vmem [thread:$0]  (!%p472_p10), %s145_s28, 512, %s147_s5, [#allocation6], %s693_s29, %s693_s29, %s694_s30  }
  0x14   : > { %p34_p12 = scmp.ne.s32.totalorder %s686_s14, %s682_s13  ;;  %p25_p13 = scmp.eq.s32.totalorder %s24_s8, 0 }
  0x15   : > { %p35_p0 = scmp.eq.s32.totalorder %s690_s15, 0  ;;  %p488_p5 = scmp.lt.s32.totalorder %s690_s15, 2 }
  0x16   : > { %p790_p3 = por %p106_p2, %p34_p12  ;;  %s160_s11 = sand.u32 1, %s686_s14  }
  0x17   : > { %s796_s10 = scalar_select %p25_p13, %s686_s14, %s27_s7  }
  0x18   : > { %p36_p7 = por %p35_p0, %p34_p12  ;;  %s396_s17 = sshll.u32 %s160_s11, 5 }
  0x19   : > { %s409_s20 = sshll.u32 %s690_s15, 5  ;;  %s164_s25 = scalar_lea.vmem [#allocation2], %s396_s17 }
  0x1a   : > { %s169_s24 = scalar_lea.hbm %s878_s0, %s409_s20  ;;  %s172_s26 = sshll.u32 %s164_s25, 4  ;;  %s173_s26 = int_to_ptr.vmem [resolvable:$true] %s172_s26 }
  0x1b   : > { %s170_s27 = sshll.u32 %s169_s24, 4  ;;  %p803_p2 = pnand %p488_p5, %p36_p7  ;;  %s171_s27 = int_to_ptr.hbm [resolvable:$true] %s170_s27 }
  0x1c   : > { %s161_s4 = scalar_lea.sflag [#allocation3], %s160_s11  ;;  %s590_s5 = sshra.s32 %s171_s27, 4  ;;  %s591_s5 = int_to_ptr.hbm [resolvable:$true] %s590_s5 }
  0x1d   : > { %s592_s7 = scalar_lea.hbm %s591_s5, 32  ;;  %p594_p10 = pneg %p803_p2 }
  0x1e   : > { %p593_p9 = scmp.ne.s32.totalorder %s591_s5, %s592_s7  ;;  %s597_s20 = scalar_lea.hbm %s878_s0, 64 }
  0x1f   : > { %p598_p0 = scmp.lt.s32.totalorder %s591_s5, %s878_s0  ;;  %p599_p5 = scmp.lt.s32.totalorder %s597_s20, %s592_s7 }
  0x20   : > { %p595_p12 = pnand %p594_p10, %p593_p9 }
  0x21   : > { %p600_p7 = por %p599_p5, %p598_p0 }
  0x22   : > { %p596_p13 = pneg %p595_p12 }
  0x24   : > { %p601_p11 = pnand %p600_p7, %p596_p13 }
  0x26   : > { %604 = shalt.err (!%p601_p11)
}
  0x27   : > { %481 = dma.hbm_to_vmem [thread:$0]  (!%p803_p2), %s171_s27, 512, %s173_s26, %s161_s4, %s693_s29, %s693_s29, %s694_s30  }
  0x28   : > { %184 = sbr.rel (%p761_p8) target bundleno = 219 (0xdb), region = 32  ;;  %s823_s11 = sand.u32 (!%p761_p8), 1, %s682_s13  }
  0x29   : > { %s400_s24 = sshll.u32 (!%p761_p8), %s823_s11, 5  ;;  %s187_s25 = scalar_lea.sflag (!%p761_p8), [#allocation3], %s823_s11 }
  0x2a   : > { %s829_s5 = scalar_lea.vmem (!%p761_p8), [#allocation2], %s400_s24 }
  0x2d   : > { %665 = dma.done.wait (%p748_p4), %s187_s25, 512  }
  0x2e   : > { %667 = vsyncadd (%p748_p4), %s187_s25, 4294966784 }
  0x2f   : > { %669 = dma.done.wait (%p41_p1), [#allocation6], 2560  }
  0x30   : > { %671 = vsyncadd (%p41_p1), [#allocation6], 4294964736  ;;  %v245_v0 = vld [vmem:[#allocation5 + $0x78] sm:$0xff]  ;;  %v244_v1 = vld [vmem:[#allocation5 + $0x70] sm:$0xff]  ;;  %s410_s18 = sshll.u32 %s739_s16, 5  ;;  %s223_s26 = scalar_lea.vmem [#allocation8], %s400_s24 }
  0x31   : > { %412 = vmatpush.msra.mxu2 %v245_v0  ;;  %413 = vmatpush.msra.mxu3 %v245_v0  ;;  %v243_v2 = vld [vmem:[#allocation5 + $0x68] sm:$0xff]  ;;  %v242_v3 = vld [vmem:[#allocation5 + $0x60] sm:$0xff]  ;;  %v241_v4 = vld [vmem:[#allocation5 + $0x58] sm:$0xff]  ;;  %s295_s30 = scalar_lea.hbm %s881_s3, %s410_s18  ;;  %s296_s27 = sshll.u32 %s223_s26, 4  ;;  %s297_s27 = int_to_ptr.vmem [resolvable:$true] %s296_s27 }
  0x32   : > { %250 = vmatpush.msra.mxu0 %v245_v0  ;;  %411 = vmatpush.msra.mxu1 %v245_v0  ;;  %v240_v5 = vld [vmem:[#allocation5 + $0x50] sm:$0xff]  ;;  %v239_v6 = vld [vmem:[#allocation5 + $0x48] sm:$0xff]  ;;  %v238_v7 = vld [vmem:[#allocation5 + $0x40] sm:$0xff]  ;;  %s298_s28 = sshll.u32 %s295_s30, 4  ;;  %s284_s16 = scalar_lea.sflag [#allocation4], %s823_s11  ;;  %s299_s28 = int_to_ptr.hbm [resolvable:$true] %s298_s28 }
  0x33   : > { %415 = vmatpush.msra.mxu2 %v244_v1  ;;  %416 = vmatpush.msra.mxu3 %v244_v1  ;;  %v237_v8 = vld [vmem:[#allocation5 + $0x38] sm:$0xff]  ;;  %v236_v9 = vld [vmem:[#allocation5 + $0x30] sm:$0xff]  ;;  %v235_v10 = vld [vmem:[#allocation5 + $0x28] sm:$0xff]  ;;  %s634_s4 = sshra.s32 %s299_s28, 4  ;;  %s640_s20 = scalar_lea.hbm %s881_s3, 64  ;;  %s635_s4 = int_to_ptr.hbm [resolvable:$true] %s634_s4 }
  0x34   : > { %251 = vmatpush.msra.mxu0 %v244_v1  ;;  %414 = vmatpush.msra.mxu1 %v244_v1  ;;  %v234_v11 = vld [vmem:[#allocation5 + $0x20] sm:$0xff]  ;;  %v233_v12 = vld [vmem:[#allocation5 + $0x18] sm:$0xff]  ;;  %v232_v13 = vld [vmem:[#allocation5 + $0x10] sm:$0xff]  ;;  %s636_s7 = scalar_lea.hbm %s635_s4, 32  ;;  %p641_p11 = scmp.lt.s32.totalorder %s635_s4, %s881_s3 }
  0x35   : > { %418 = vmatpush.msra.mxu2 %v243_v2  ;;  %419 = vmatpush.msra.mxu3 %v243_v2  ;;  %v231_v14 = vld [vmem:[#allocation5 + $0x8] sm:$0xff]  ;;  %v230_v15 = vld [vmem:[#allocation5] sm:$0xff]  ;;  %v228_v16 = vld [vmem:[%s829_s5 + $0x10] sm:$0xff]  ;;  %p637_p1 = scmp.ne.s32.totalorder %s635_s4, %s636_s7  ;;  %p642_p2 = scmp.lt.s32.totalorder %s640_s20, %s636_s7 }
  0x36   : > { %252 = vmatpush.msra.mxu0 %v243_v2  ;;  %417 = vmatpush.msra.mxu1 %v243_v2  ;;  %v229_v17 = vld [vmem:[%s829_s5 + $0x18] sm:$0xff]  ;;  %v226_v18 = vld [vmem:[%s829_s5] sm:$0xff]  ;;  %v227_v19 = vld [vmem:[%s829_s5 + $0x8] sm:$0xff] }
  0x37   : > { %421 = vmatpush.msra.mxu2 %v242_v3  ;;  %422 = vmatpush.msra.mxu3 %v242_v3  ;;  %v246_v20 = vld [vmem:[#allocation7] sm:$0xff]  ;;  %v247_v21 = vld [vmem:[#allocation7 + $0x8] sm:$0xff]  ;;  %v248_v26 = vld [vmem:[#allocation7 + $0x10] sm:$0xff]  ;;  %p638_p4 = pnand %p637_p1, %p790_p3  ;;  %p643_p9 = por %p642_p2, %p641_p11 }
  0x38   : > { %253 = vmatpush.msra.mxu0 %v242_v3  ;;  %420 = vmatpush.msra.mxu1 %v242_v3  ;;  %v249_v27 = vld [vmem:[#allocation7 + $0x18] sm:$0xff] }
  0x39   : > { %424 = vmatpush.msra.mxu2 %v241_v4  ;;  %425 = vmatpush.msra.mxu3 %v241_v4  ;;  %p639_p8 = pneg %p638_p4 }
  0x3a   : > { %254 = vmatpush.msra.mxu0 %v241_v4  ;;  %423 = vmatpush.msra.mxu1 %v241_v4 }
  0x3b   : > { %427 = vmatpush.msra.mxu2 %v240_v5  ;;  %428 = vmatpush.msra.mxu3 %v240_v5  ;;  %p644_p10 = pnand %p643_p9, %p639_p8 }
  0x3c   : > { %255 = vmatpush.msra.mxu0 %v240_v5  ;;  %426 = vmatpush.msra.mxu1 %v240_v5 }
  0x3d   : > { %430 = vmatpush.msra.mxu2 %v239_v6  ;;  %431 = vmatpush.msra.mxu3 %v239_v6 }
  0x3e   : > { %256 = vmatpush.msra.mxu0 %v239_v6  ;;  %429 = vmatpush.msra.mxu1 %v239_v6 }
  0x3f   : > { %433 = vmatpush.msra.mxu2 %v238_v7  ;;  %434 = vmatpush.msra.mxu3 %v238_v7 }
  0x40   : > { %257 = vmatpush.msra.mxu0 %v238_v7  ;;  %432 = vmatpush.msra.mxu1 %v238_v7 }
  0x41   : > { %436 = vmatpush.msra.mxu2 %v237_v8  ;;  %437 = vmatpush.msra.mxu3 %v237_v8 }
  0x42   : > { %258 = vmatpush.msra.mxu0 %v237_v8  ;;  %435 = vmatpush.msra.mxu1 %v237_v8 }
  0x43   : > { %439 = vmatpush.msra.mxu2 %v236_v9  ;;  %440 = vmatpush.msra.mxu3 %v236_v9 }
  0x44   : > { %259 = vmatpush.msra.mxu0 %v236_v9  ;;  %438 = vmatpush.msra.mxu1 %v236_v9 }
  0x45   : > { %442 = vmatpush.msra.mxu2 %v235_v10  ;;  %443 = vmatpush.msra.mxu3 %v235_v10 }
  0x46   : > { %260 = vmatpush.msra.mxu0 %v235_v10  ;;  %441 = vmatpush.msra.mxu1 %v235_v10 }
  0x47   : > { %445 = vmatpush.msra.mxu2 %v234_v11  ;;  %446 = vmatpush.msra.mxu3 %v234_v11 }
  0x48   : > { %261 = vmatpush.msra.mxu0 %v234_v11  ;;  %444 = vmatpush.msra.mxu1 %v234_v11 }
  0x49   : > { %448 = vmatpush.msra.mxu2 %v233_v12  ;;  %449 = vmatpush.msra.mxu3 %v233_v12 }
  0x4a   : > { %262 = vmatpush.msra.mxu0 %v233_v12  ;;  %447 = vmatpush.msra.mxu1 %v233_v12 }
  0x4b   : > { %451 = vmatpush.msra.mxu2 %v232_v13  ;;  %452 = vmatpush.msra.mxu3 %v232_v13 }
  0x4c   : > { %263 = vmatpush.msra.mxu0 %v232_v13  ;;  %450 = vmatpush.msra.mxu1 %v232_v13 }
  0x4d   : > { %454 = vmatpush.msra.mxu2 %v231_v14  ;;  %455 = vmatpush.msra.mxu3 %v231_v14 }
  0x4e   : > { %264 = vmatpush.msra.mxu0 %v231_v14  ;;  %453 = vmatpush.msra.mxu1 %v231_v14 }
  0x4f   : > { %457 = vmatpush.msra.mxu2 %v230_v15  ;;  %458 = vmatpush.msra.mxu3 %v230_v15 }
  0x50   : > { %272 = vmatmul.f32.vlgmr.msra.gmra.mxu2 %v228_v16  ;;  %275 = vmatmul.f32.vlgmr.msra.gmra.mxu3 %v229_v17 }
  0x51   : > { %265 = vmatpush.msra.mxu0 %v230_v15  ;;  %456 = vmatpush.msra.mxu1 %v230_v15 }
  0x52   : > { %266 = vmatmul.f32.vlgmr.msra.gmra.mxu0 %v226_v18  ;;  %269 = vmatmul.f32.vlgmr.msra.gmra.mxu1 %v227_v19 }
  0xcf   : > { %v267_v22 = vpop.f32.mrf.mxu0  ;;  %v270_v23 = vpop.f32.mrf.mxu1 }
  0xd0   : > { %v268_v24 = vadd.f32 %v267_v22, %v246_v20  ;;  %v271_v25 = vadd.f32 %v270_v23, %v247_v21 }
  0xd2   : > { %279 = vst [vmem:[%s223_s26] sm:$0xff] %v268_v24 }
  0xd3   : > { %280 = vst [vmem:[%s223_s26 + $0x8] sm:$0xff] %v271_v25  ;;  %v273_v28 = vpop.f32.mrf.mxu2  ;;  %v276_v29 = vpop.f32.mrf.mxu3 }
  0xd4   : > { %v274_v30 = vadd.f32 %v273_v28, %v248_v26  ;;  %v277_v31 = vadd.f32 %v276_v29, %v249_v27 }
  0xd6   : > { %281 = vst [vmem:[%s223_s26 + $0x10] sm:$0xff] %v274_v30 }
  0xd7   : > { %282 = vst [vmem:[%s223_s26 + $0x18] sm:$0xff] %v277_v31 }
  0xd8   : > { %647 = shalt.err (!%p644_p10)
}
  0xd9   : > { %s696_s11 = smov 128   ;;  %s697_s24 = smov 8  }
  0xda   : > { %469 = dma.vmem_to_hbm [thread:$0]  (%p790_p3), %s297_s27, 512, %s299_s28, %s284_s16, %s696_s11, %s696_s11, %s697_s24  }
  0xdb PF: > { %s313_s25 = sand.u32 1, %s678_s12   ;;  %p887_p12 = scmp.ge.s32.totalorder %s690_s15, 2 }
  0xdc   : > { %s314_s5 = scalar_lea.sflag [#allocation4], %s313_s25 }
  0xdd   : > { %p483_p13 = pnand %p887_p12, %p753_p6 }
  0xdf   : > { %p484_p0 = pneg %p483_p13 }
  0xe1   : > { %673 = dma.done.wait (%p484_p0), %s314_s5, 512  }
  0xe2   : > { %675 = vsyncadd (%p484_p0), %s314_s5, 4294966784  ;;  %p17_p5 = scmp.ge.s32.totalorder %s780_s6, 4   ;;  %s888_s12 = smov %s682_s13 }
  0xe3   : > { %s889_s13 = smov %s686_s14  ;;  %s890_s14 = smov %s796_s10 }
  0xe4   : > { %s891_s15 = smov %s780_s6  ;;  %19 = sbr.rel (!%p17_p5) target bundleno = 6 (0x6), region = 85 }
  0xe9   :  { %320 = vsyncpa [#allocation3], 1 }
  0xea   :  { %322 = vsyncpa [#allocation3 + $0x1], 1 }
  0xeb   :  { %323 = vsyncpa [#allocation6], 1 }
  0xec   :  { %324 = vsyncpa [#allocation4], 1 }
  0xed   :  { %326 = vsyncpa [#allocation4 + $0x1], 1 }

</bundles_post_ra>
